<compile_context>
chip_gen: v5e
topology: v5e:2x2
jax: 0.10.0
libtpu: 0.0.40
codegen_flags: <defaults>
</compile_context>

<pallas_src>
import functools

import jax
import jax.numpy as jnp
from jax.experimental import pallas as pl
from jax.experimental.pallas import tpu as pltpu

_LANE = 128
_SUBLANE = 8


def _round_up(x, m):
    return (x + m - 1) // m * m


def _fused_mlp_kernel(x_ref, *refs, negative_slope, apply_act_flags):
    """Fused N-layer MLP on one batch tile.

    refs = (w1, b1, w2, b2, ..., wN, bN, o_ref).
    wi: (Din_i, Dout_i) bf16, bi: (1, Dout_i) f32. Matmuls hit the MXU with
    bf16 operands / f32 accumulation; bias + LeakyReLU epilogue stays in f32 on
    the VPU. Intermediate activations live only in vregs / compiler VMEM.
    """
    n = len(apply_act_flags)
    o_ref = refs[-1]
    h = x_ref[...]  # f32 activations
    for i in range(n):
        w = refs[2 * i][...]        # bf16 (Din_i, Dout_i)
        b = refs[2 * i + 1][...]    # f32 (1, Dout_i)
        y = jnp.dot(h.astype(jnp.bfloat16), w,
                    preferred_element_type=jnp.float32) + b
        if apply_act_flags[i]:
            if 0.0 <= negative_slope <= 1.0:
                # max(y, slope*y) == LeakyReLU for slope in [0, 1]
                y = jnp.maximum(y, negative_slope * y)
            else:
                y = jnp.where(y >= 0.0, y, negative_slope * y)
        h = y
    o_ref[...] = h.astype(o_ref.dtype)


def prepare_mlp_params(params):
    """One-time parameter prep, hoisted out of the forward hot path.

    params: list of (w, b) with w: (Din_i, Dout_i) f32 already scaled by w_mul
            and pre-transposed, b: (Dout_i,) f32 already scaled by b_mul.
    Returns list of (w_bf16, b_f32_row) with the last layer zero-padded to a
    lane-dense (multiple of 128) output width.
    """
    n = len(params)
    prepped = []
    for i, (w, b) in enumerate(params):
        if i == n - 1:
            d_out = w.shape[1]
            d_pad = _round_up(d_out, _LANE)
            if d_pad != d_out:
                w = jnp.pad(w, ((0, 0), (0, d_pad - d_out)))
                b = jnp.pad(b, (0, d_pad - d_out))
        prepped.append((w.astype(jnp.bfloat16),
                        b.astype(jnp.float32).reshape(1, -1)))
    return prepped


def mlp_forward(x, prepped, *, out_dim, negative_slope=0.2, end_with_act=True,
                block_batch=512):
    """Fused MLP forward.

    x: (B, Din) f32.  prepped: output of prepare_mlp_params().
    """
    n = len(prepped)
    B, Din = x.shape
    Dout_pad = prepped[-1][0].shape[1]

    # Batch tiling: pad only to a sublane multiple (8); pick TB so the grid has
    # >= 2 steps whenever the batch allows it (so "parallel" actually shards
    # work across v7x's two TensorCores) and padding waste stays < TB rows.
    B8 = _round_up(B, _SUBLANE)
    TB = min(block_batch, B8)
    if B8 >= 2 * _SUBLANE:
        TB = min(TB, _round_up(pl.cdiv(B8, 2), _SUBLANE))
    TB = max(TB, _SUBLANE)
    B_pad = _round_up(B8, TB)
    if B_pad != B:
        x = jnp.pad(x, ((0, B_pad - B), (0, 0)))
    grid = (B_pad // TB,)

    apply_act_flags = tuple(end_with_act or (i < n - 1) for i in range(n))

    in_specs = [pl.BlockSpec((TB, Din), lambda i: (i, 0))]
    flat_inputs = [x]
    for (w, b) in prepped:
        # Constant index maps -> weights/biases stay VMEM-resident across the
        # batch grid; only the activation tiles are double-buffered.
        in_specs.append(pl.BlockSpec(w.shape, lambda i: (0, 0)))
        in_specs.append(pl.BlockSpec(b.shape, lambda i: (0, 0)))
        flat_inputs += [w, b]

    kernel = functools.partial(
        _fused_mlp_kernel,
        negative_slope=negative_slope,
        apply_act_flags=apply_act_flags,
    )

    out = pl.pallas_call(
        kernel,
        out_shape=jax.ShapeDtypeStruct((B_pad, Dout_pad), jnp.float32),
        grid=grid,
        in_specs=in_specs,
        out_specs=pl.BlockSpec((TB, Dout_pad), lambda i: (i, 0)),
        compiler_params=pltpu.CompilerParams(
            dimension_semantics=("parallel",),  # v7x: shard batch over 2 TCs
        ),
    )(*flat_inputs)

    # TODO(synk): if the consumer tolerates it, fuse this slice into the next
    # kernel or emit bf16 output to shrink the dominant HBM write stream.
    return out[:B, :out_dim]


def init_mlp_params(key, in_dim, h_dim=256, out_dim=42, layers=4,
                    gain=2.0 ** 0.5, lrmul=0.01):
    """Deterministic EqualizedLinear parameter init (matches PyTorch shapes),
    with w_mul/b_mul folded into effective f32 weights (in, out) / biases."""
    dims = [in_dim] + [h_dim] * (layers - 1) + [out_dim]
    params = []
    for li in range(layers):
        d_in, d_out = dims[li], dims[li + 1]
        key, wkey = jax.random.split(key)
        he_std = gain * (d_in ** -0.5)
        init_std = 1.0 / lrmul          # use_wscale=True
        w_mul = he_std * lrmul
        b_mul = lrmul
        # PyTorch stores weight as (out, in); fold w_mul, transpose to (in, out).
        w_raw = jax.random.normal(wkey, (d_out, d_in), dtype=jnp.float32) * init_std
        w_eff = (w_raw * w_mul).T
        b_raw = jnp.zeros((d_out,), dtype=jnp.float32)
        b_eff = b_raw * b_mul
        params.append((w_eff, b_eff))
    return params


if __name__ == "__main__":
    key = jax.random.PRNGKey(0)
    xkey, pkey = jax.random.split(key)

    batch, in_dim, h_dim, out_dim, n_layers = 8, 32, 256, 42, 4
    negative_slope = 0.2
    end_with_act = True

    x = jax.random.normal(xkey, (batch, in_dim), dtype=jnp.float32)

    params = init_mlp_params(pkey, in_dim, h_dim=h_dim, out_dim=out_dim,
                             layers=n_layers)
    prepped = prepare_mlp_params(params)   # one-time prep (pad/cast/reshape)

    out = mlp_forward(x, prepped, out_dim=out_dim,
                      negative_slope=negative_slope,
                      end_with_act=end_with_act)
    out = jax.block_until_ready(out)

    # Pure-JAX reference with the same bf16-operand / f32-accumulation math.
    ref = x
    for i, (w, b) in enumerate(params):
        ref = jnp.dot(ref.astype(jnp.bfloat16), w.astype(jnp.bfloat16),
                      preferred_element_type=jnp.float32) + b
        if end_with_act or i < n_layers - 1:
            ref = jnp.where(ref >= 0.0, ref, negative_slope * ref)

    assert out.shape == (batch, out_dim)
    assert jnp.allclose(out, ref, atol=2e-2, rtol=2e-2)

    print("KERNEL_OK")
</pallas_src>

<mosaic_0001>
module attributes {stable_mosaic.version = 11 : i64} {
  func.func @_fused_mlp_kernel(%arg0: i32, %arg1: memref<8x32xf32, #tpu.memory_space<vmem>>, %arg2: memref<32x256xbf16, #tpu.memory_space<vmem>>, %arg3: memref<1x256xf32, #tpu.memory_space<vmem>>, %arg4: memref<256x256xbf16, #tpu.memory_space<vmem>>, %arg5: memref<1x256xf32, #tpu.memory_space<vmem>>, %arg6: memref<256x256xbf16, #tpu.memory_space<vmem>>, %arg7: memref<1x256xf32, #tpu.memory_space<vmem>>, %arg8: memref<256x128xbf16, #tpu.memory_space<vmem>>, %arg9: memref<1x128xf32, #tpu.memory_space<vmem>>, %arg10: memref<8x128xf32, #tpu.memory_space<vmem>>) attributes {dimension_semantics = [#tpu.dimension_semantics<parallel>], iteration_bounds = array<i64: 1>, scalar_prefetch = 0 : i64, scratch_operands = 0 : i64, tpu.core_type = #tpu.core_type<tc>, window_params = [{transform_indices = @transform_0, window_bounds = array<i64: 8, 32>}, {pipeline_mode = #tpu.pipeline_mode<synchronous>, transform_indices = @transform_1, window_bounds = array<i64: 32, 256>}, {pipeline_mode = #tpu.pipeline_mode<synchronous>, transform_indices = @transform_2, window_bounds = array<i64: 1, 256>}, {pipeline_mode = #tpu.pipeline_mode<synchronous>, transform_indices = @transform_3, window_bounds = array<i64: 256, 256>}, {pipeline_mode = #tpu.pipeline_mode<synchronous>, transform_indices = @transform_4, window_bounds = array<i64: 1, 256>}, {pipeline_mode = #tpu.pipeline_mode<synchronous>, transform_indices = @transform_5, window_bounds = array<i64: 256, 256>}, {pipeline_mode = #tpu.pipeline_mode<synchronous>, transform_indices = @transform_6, window_bounds = array<i64: 1, 256>}, {pipeline_mode = #tpu.pipeline_mode<synchronous>, transform_indices = @transform_7, window_bounds = array<i64: 256, 128>}, {pipeline_mode = #tpu.pipeline_mode<synchronous>, transform_indices = @transform_8, window_bounds = array<i64: 1, 128>}, {transform_indices = @transform_9, window_bounds = array<i64: 8, 128>}]} {
    %c0 = arith.constant 0 : index
    %c0_0 = arith.constant 0 : index
    %0 = vector.load %arg1[%c0, %c0_0] : memref<8x32xf32, #tpu.memory_space<vmem>>, vector<8x32xf32>
    %c0_1 = arith.constant 0 : index
    %c0_2 = arith.constant 0 : index
    %1 = vector.load %arg2[%c0_1, %c0_2] : memref<32x256xbf16, #tpu.memory_space<vmem>>, vector<32x256xbf16>
    %c0_3 = arith.constant 0 : index
    %c0_4 = arith.constant 0 : index
    %2 = vector.load %arg3[%c0_3, %c0_4] : memref<1x256xf32, #tpu.memory_space<vmem>>, vector<1x256xf32>
    %3 = arith.truncf %0 : vector<8x32xf32> to vector<8x32xbf16>
    %cst = arith.constant dense<0.000000e+00> : vector<8x256xf32>
    %4 = tpu.matmul %3, %1, %cst {dimension_numbers = #tpu.dot_dimension_numbers<[1], [0], [0], [1], [0, 0, 1, 1], [], []>} : vector<8x32xbf16>, vector<32x256xbf16>, vector<8x256xf32> -> vector<8x256xf32>
    %5 = vector.broadcast %2 : vector<1x256xf32> to vector<8x256xf32>
    %6 = arith.addf %4, %5 : vector<8x256xf32>
    %cst_5 = arith.constant 2.000000e-01 : f32
    %7 = vector.broadcast %cst_5 : f32 to vector<8x256xf32>
    %8 = arith.mulf %7, %6 : vector<8x256xf32>
    %9 = arith.maximumf %6, %8 : vector<8x256xf32>
    %c0_6 = arith.constant 0 : index
    %c0_7 = arith.constant 0 : index
    %10 = vector.load %arg4[%c0_6, %c0_7] : memref<256x256xbf16, #tpu.memory_space<vmem>>, vector<256x256xbf16>
    %c0_8 = arith.constant 0 : index
    %c0_9 = arith.constant 0 : index
    %11 = vector.load %arg5[%c0_8, %c0_9] : memref<1x256xf32, #tpu.memory_space<vmem>>, vector<1x256xf32>
    %12 = arith.truncf %9 : vector<8x256xf32> to vector<8x256xbf16>
    %cst_10 = arith.constant dense<0.000000e+00> : vector<8x256xf32>
    %13 = tpu.matmul %12, %10, %cst_10 {dimension_numbers = #tpu.dot_dimension_numbers<[1], [0], [0], [1], [0, 0, 1, 1], [], []>} : vector<8x256xbf16>, vector<256x256xbf16>, vector<8x256xf32> -> vector<8x256xf32>
    %14 = vector.broadcast %11 : vector<1x256xf32> to vector<8x256xf32>
    %15 = arith.addf %13, %14 : vector<8x256xf32>
    %cst_11 = arith.constant 2.000000e-01 : f32
    %16 = vector.broadcast %cst_11 : f32 to vector<8x256xf32>
    %17 = arith.mulf %16, %15 : vector<8x256xf32>
    %18 = arith.maximumf %15, %17 : vector<8x256xf32>
    %c0_12 = arith.constant 0 : index
    %c0_13 = arith.constant 0 : index
    %19 = vector.load %arg6[%c0_12, %c0_13] : memref<256x256xbf16, #tpu.memory_space<vmem>>, vector<256x256xbf16>
    %c0_14 = arith.constant 0 : index
    %c0_15 = arith.constant 0 : index
    %20 = vector.load %arg7[%c0_14, %c0_15] : memref<1x256xf32, #tpu.memory_space<vmem>>, vector<1x256xf32>
    %21 = arith.truncf %18 : vector<8x256xf32> to vector<8x256xbf16>
    %cst_16 = arith.constant dense<0.000000e+00> : vector<8x256xf32>
    %22 = tpu.matmul %21, %19, %cst_16 {dimension_numbers = #tpu.dot_dimension_numbers<[1], [0], [0], [1], [0, 0, 1, 1], [], []>} : vector<8x256xbf16>, vector<256x256xbf16>, vector<8x256xf32> -> vector<8x256xf32>
    %23 = vector.broadcast %20 : vector<1x256xf32> to vector<8x256xf32>
    %24 = arith.addf %22, %23 : vector<8x256xf32>
    %cst_17 = arith.constant 2.000000e-01 : f32
    %25 = vector.broadcast %cst_17 : f32 to vector<8x256xf32>
    %26 = arith.mulf %25, %24 : vector<8x256xf32>
    %27 = arith.maximumf %24, %26 : vector<8x256xf32>
    %c0_18 = arith.constant 0 : index
    %c0_19 = arith.constant 0 : index
    %28 = vector.load %arg8[%c0_18, %c0_19] : memref<256x128xbf16, #tpu.memory_space<vmem>>, vector<256x128xbf16>
    %c0_20 = arith.constant 0 : index
    %c0_21 = arith.constant 0 : index
    %29 = vector.load %arg9[%c0_20, %c0_21] : memref<1x128xf32, #tpu.memory_space<vmem>>, vector<1x128xf32>
    %30 = arith.truncf %27 : vector<8x256xf32> to vector<8x256xbf16>
    %cst_22 = arith.constant dense<0.000000e+00> : vector<8x128xf32>
    %31 = tpu.matmul %30, %28, %cst_22 {dimension_numbers = #tpu.dot_dimension_numbers<[1], [0], [0], [1], [0, 0, 1, 1], [], []>} : vector<8x256xbf16>, vector<256x128xbf16>, vector<8x128xf32> -> vector<8x128xf32>
    %32 = vector.broadcast %29 : vector<1x128xf32> to vector<8x128xf32>
    %33 = arith.addf %31, %32 : vector<8x128xf32>
    %cst_23 = arith.constant 2.000000e-01 : f32
    %34 = vector.broadcast %cst_23 : f32 to vector<8x128xf32>
    %35 = arith.mulf %34, %33 : vector<8x128xf32>
    %36 = arith.maximumf %33, %35 : vector<8x128xf32>
    %c0_24 = arith.constant 0 : index
    %c0_25 = arith.constant 0 : index
    %37 = vector.load %arg10[%c0_24, %c0_25] : memref<8x128xf32, #tpu.memory_space<vmem>>, vector<8x128xf32>
    tpu.vector_store %arg10[%c0_24, %c0_25], %36 {strides = array<i32>} : memref<8x128xf32, #tpu.memory_space<vmem>>, vector<8x128xf32>,
    return
  }
  func.func @transform_0(%arg0: i32) -> (i32, i32) {
    %c0_i32 = arith.constant 0 : i32
    %c0_i32_0 = arith.constant 0 : i32
    return %arg0, %c0_i32 : i32, i32
  }
  func.func @transform_1(%arg0: i32) -> (i32, i32) {
    %c0_i32 = arith.constant 0 : i32
    %c0_i32_0 = arith.constant 0 : i32
    %c0_i32_1 = arith.constant 0 : i32
    return %c0_i32, %c0_i32_0 : i32, i32
  }
  func.func @transform_2(%arg0: i32) -> (i32, i32) {
    %c0_i32 = arith.constant 0 : i32
    %c0_i32_0 = arith.constant 0 : i32
    %c0_i32_1 = arith.constant 0 : i32
    return %c0_i32, %c0_i32_0 : i32, i32
  }
  func.func @transform_3(%arg0: i32) -> (i32, i32) {
    %c0_i32 = arith.constant 0 : i32
    %c0_i32_0 = arith.constant 0 : i32
    %c0_i32_1 = arith.constant 0 : i32
    return %c0_i32, %c0_i32_0 : i32, i32
  }
  func.func @transform_4(%arg0: i32) -> (i32, i32) {
    %c0_i32 = arith.constant 0 : i32
    %c0_i32_0 = arith.constant 0 : i32
    %c0_i32_1 = arith.constant 0 : i32
    return %c0_i32, %c0_i32_0 : i32, i32
  }
  func.func @transform_5(%arg0: i32) -> (i32, i32) {
    %c0_i32 = arith.constant 0 : i32
    %c0_i32_0 = arith.constant 0 : i32
    %c0_i32_1 = arith.constant 0 : i32
    return %c0_i32, %c0_i32_0 : i32, i32
  }
  func.func @transform_6(%arg0: i32) -> (i32, i32) {
    %c0_i32 = arith.constant 0 : i32
    %c0_i32_0 = arith.constant 0 : i32
    %c0_i32_1 = arith.constant 0 : i32
    return %c0_i32, %c0_i32_0 : i32, i32
  }
  func.func @transform_7(%arg0: i32) -> (i32, i32) {
    %c0_i32 = arith.constant 0 : i32
    %c0_i32_0 = arith.constant 0 : i32
    %c0_i32_1 = arith.constant 0 : i32
    return %c0_i32, %c0_i32_0 : i32, i32
  }
  func.func @transform_8(%arg0: i32) -> (i32, i32) {
    %c0_i32 = arith.constant 0 : i32
    %c0_i32_0 = arith.constant 0 : i32
    %c0_i32_1 = arith.constant 0 : i32
    return %c0_i32, %c0_i32_0 : i32, i32
  }
  func.func @transform_9(%arg0: i32) -> (i32, i32) {
    %c0_i32 = arith.constant 0 : i32
    %c0_i32_0 = arith.constant 0 : i32
    return %arg0, %c0_i32 : i32, i32
  }
}

</mosaic_0001>

<bundles_post_ra>
// kernel: tpu_custom_call.1
= control target key start
LH: loop header
LB: loop body
LE: loop exit
PB: predicated region body
PF: predicated region fallthrough
CT: control target
= control target key end

     0   :  { %14 = vsyncpa [#allocation3], 0  ;;  %s1599_s0 = inlined_call_operand.hbm [shape: f32[8,32], index: 0, kind: input, shape index: {}]   ;;  %s1600_s1 = inlined_call_operand.hbm [shape: bf16[32,256], index: 1, kind: input, shape index: {}]   ;;  %s1601_s2 = inlined_call_operand.hbm [shape: f32[1,256], index: 2, kind: input, shape index: {}]   ;;  %s1602_s3 = inlined_call_operand.hbm [shape: bf16[256,256], index: 3, kind: input, shape index: {}]   ;;  %s1603_s4 = inlined_call_operand.vmem [shape: f32[1,256], index: 4, kind: input, shape index: {}]   ;;  %s1604_s5 = inlined_call_operand.hbm [shape: bf16[256,256], index: 5, kind: input, shape index: {}]   ;;  %s1605_s6 = inlined_call_operand.vmem [shape: f32[1,256], index: 6, kind: input, shape index: {}]   ;;  %s1606_s7 = inlined_call_operand.hbm [shape: bf16[256,128], index: 7, kind: input, shape index: {}]   ;;  %s1607_s8 = inlined_call_operand.vmem [shape: f32[1,128], index: 8, kind: input, shape index: {}]   ;;  %s1608_s9 = inlined_call_operand.hbm [shape: f32[8,128], index: 9, kind: output, shape index: {}]  }
   0x1   :  { %15 = vsyncpa [#allocation6], 0 }
   0x2   :  { %16 = vsyncpa [#allocation9], 0 }
   0x3   :  { %17 = vsyncpa [#allocation12], 0  ;;  %s34_s11 = sshll.u32 %s1600_s1, 4  ;;  %s35_s11 = int_to_ptr.hbm [resolvable:$true] %s34_s11 }
   0x4   :  { %18 = vsyncpa [#allocation4], 0  ;;  %s1497_s12 = smov [#allocation5]   ;;  %s58_s16 = sshll.u32 %s1602_s3, 4  ;;  %s59_s16 = int_to_ptr.hbm [resolvable:$true] %s58_s16 }
   0x5   :  { %s36_s13 = sshll.u32 %s1497_s12, 4  ;;  %s1498_s17 = smov 128   ;;  %s37_s13 = int_to_ptr.vmem [resolvable:$true] %s36_s13 }
   0x6   :  { %s1499_s18 = smov 8   ;;  %s1500_s19 = smov [#allocation8]  }
   0x7   :  { %42 = dma.hbm_to_vmem [thread:$0]  %s35_s11, 512, %s37_s13, [#allocation6], %s1498_s17, %s1498_s17, %s1499_s18  }
   0x8   :  { %s60_s20 = sshll.u32 %s1500_s19, 4  ;;  %s24_s22 = sshll.u32 %s1599_s0, 4  ;;  %s61_s20 = int_to_ptr.vmem [resolvable:$true] %s60_s20  ;;  %s25_s22 = int_to_ptr.hbm [resolvable:$true] %s24_s22 }
   0x9   :  { %66 = dma.hbm_to_vmem [thread:$0]  %s59_s16, 4096, %s61_s20, [#allocation9], %s1498_s17, %s1498_s17, %s1499_s18  }
   0xa   :  { %s48_s24 = sshll.u32 %s1601_s2, 4  ;;  %s1501_s25 = smov [#allocation2]   ;;  %s49_s24 = int_to_ptr.hbm [resolvable:$true] %s48_s24 }
   0xb   :  { %s26_s26 = sshll.u32 %s1501_s25, 4  ;;  %s1502_s27 = smov [#allocation7]   ;;  %s27_s26 = int_to_ptr.vmem [resolvable:$true] %s26_s26 }
   0xc   :  { %29 = dma.hbm_to_vmem [thread:$0]  %s25_s22, 128, %s27_s26, [#allocation3]  }
   0xd   :  { %s50_s28 = sshll.u32 %s1502_s27, 4  ;;  %s73_s0 = sshll.u32 %s1604_s5, 4  ;;  %s51_s28 = int_to_ptr.vmem [resolvable:$true] %s50_s28  ;;  %s74_s0 = int_to_ptr.hbm [resolvable:$true] %s73_s0 }
   0xe   :  { %53 = dma.hbm_to_vmem [thread:$0]  %s49_s24, 32, %s51_s28, [#allocation6]  }
   0xf   :  { %s88_s12 = sshll.u32 %s1606_s7, 4  ;;  %s1503_s13 = smov [#allocation10]   ;;  %s89_s12 = int_to_ptr.hbm [resolvable:$true] %s88_s12 }
  0x10   :  { %s75_s2 = sshll.u32 %s1503_s13, 4  ;;  %s1504_s14 = smov [#allocation11]   ;;  %s76_s2 = int_to_ptr.vmem [resolvable:$true] %s75_s2 }
  0x11   :  { %81 = dma.hbm_to_vmem [thread:$0]  %s74_s0, 4096, %s76_s2, [#allocation9], %s1498_s17, %s1498_s17, %s1499_s18  }
  0x12   :  { %s90_s15 = sshll.u32 %s1504_s14, 4  ;;  %s1505_s16 = smov 64   ;;  %s91_s15 = int_to_ptr.vmem [resolvable:$true] %s90_s15 }
  0x13   :  { %s1506_s5 = smov 4  }
  0x14   :  { %96 = dma.hbm_to_vmem [thread:$0]  %s89_s12, 2048, %s91_s15, [#allocation12], %s1505_s16, %s1505_s16, %s1506_s5  }
  0x15   :  { %1487 = dma.done.wait [#allocation3], 128  }
  0x16   :  { %1488 = vsyncadd [#allocation3], 4294967168 }
  0x17   :  { %1489 = dma.done.wait [#allocation6], 544  }
  0x18   :  { %1490 = vsyncadd [#allocation6], 4294966752 }
  0x19   :  { %1491 = dma.done.wait [#allocation9], 8192  }
  0x1a   :  { %1492 = vsyncadd [#allocation9], 4294959104 }
  0x1b   :  { %1493 = dma.done.wait [#allocation12], 2048  }
  0x1c   :  { %1494 = vsyncadd [#allocation12], 4294965248  ;;  %v895_v0 = vld [vmem:[#allocation5 + $0x10] sm:$0xf]  ;;  %v1226_v1 = vld [vmem:[#allocation5 + $0x14] sm:$0xf0] }
  0x1d   :  { %v1225_v2 = vld [vmem:[#allocation5 + $0x14] sm:$0xf]  ;;  %v896_v3 = vor.u32 %v1226_v1, %v895_v0  ;;  %v897_v4 = vld [vmem:[#allocation5 + $0x18] sm:$0xf0]  ;;  %v887_v5 = vld [vmem:[#allocation5] sm:$0xf] }
  0x1e   :  { %v1224_v6 = vld [vmem:[#allocation5 + $0x4] sm:$0xf0]  ;;  %v900_v7 = vor.u32 %v1225_v2, %v897_v4  ;;  %v1223_v8 = vld [vmem:[#allocation5 + $0x4] sm:$0xf]  ;;  %v889_v9 = vld [vmem:[#allocation5 + $0x8] sm:$0xf0] }
  0x1f   :  { %v124_v10 = vld [vmem:[#allocation2] sm:$0xff]  ;;  %vm156_vm0 = vcmask 261120   ;;  %166 = vmatpush.bf16.msra.mxu0 %v896_v3  ;;  %v888_v11 = vor.u32 %v1224_v6, %v887_v5  ;;  %v961_v12 = vld [vmem:[#allocation8 + $0x70] sm:$0xf]  ;;  %v892_v15 = vor.u32 %v1223_v8, %v889_v9  ;;  %v953_v24 = vld [vmem:[#allocation8 + $0x60] sm:$0xf] }
  0x20   :  { %v1242_v13 = vld [vmem:[#allocation8 + $0x74] sm:$0xf0]  ;;  %v1025_v14 = vld [vmem:[#allocation8 + $0xf0] sm:$0xf]  ;;  %179 = vmatpush.bf16.msra.mxu1 %v900_v7  ;;  %v1241_v18 = vld [vmem:[#allocation8 + $0x74] sm:$0xf]  ;;  %v130_v25 = vpack.c.bf16 %v124_v10, %v124_v10 }
  0x21   :  { %v962_v16 = vor.u32 %v1242_v13, %v961_v12  ;;  %v1258_v17 = vld [vmem:[#allocation8 + $0xf4] sm:$0xf0]  ;;  %v963_v19 = vld [vmem:[#allocation8 + $0x78] sm:$0xf0]  ;;  %v1257_v22 = vld [vmem:[#allocation8 + $0xf4] sm:$0xf] }
  0x22   :  { %v1026_v20 = vor.u32 %v1258_v17, %v1025_v14  ;;  %v966_v21 = vor.u32 %v1241_v18, %v963_v19  ;;  %v1027_v23 = vld [vmem:[#allocation8 + $0xf8] sm:$0xf0]  ;;  %v1240_v27 = vld [vmem:[#allocation8 + $0x64] sm:$0xf0]  ;;  %v1017_v28 = vld [vmem:[#allocation8 + $0xe0] sm:$0xf] }
  0x23   :  { %390 = vmatpush.bf16.msra.mxu2 %v962_v16  ;;  %v1030_v26 = vor.u32 %v1257_v22, %v1027_v23  ;;  %v1256_v29 = vld [vmem:[#allocation8 + $0xe4] sm:$0xf0]  ;;  %167 = vmatpush.bf16.msra.mxu0 %v888_v11  ;;  %v954_v30 = vor.u32 %v1240_v27, %v953_v24  ;;  %v1239_v32 = vld [vmem:[#allocation8 + $0x64] sm:$0xf]  ;;  %v955_v33 = vld [vmem:[#allocation8 + $0x68] sm:$0xf0] }
  0x24   :  { %403 = vmatpush.bf16.msra.mxu3 %v1026_v20  ;;  %v1018_v31 = vor.u32 %v1256_v29, %v1017_v28  ;;  %v1255_v34 = vld [vmem:[#allocation8 + $0xe4] sm:$0xf]  ;;  %180 = vmatpush.bf16.msra.mxu1 %v892_v15  ;;  %v958_v35 = vor.u32 %v1239_v32, %v955_v33  ;;  %v1019_v36 = vld [vmem:[#allocation8 + $0xe8] sm:$0xf0]  ;;  %v945_v37 = vld [vmem:[#allocation8 + $0x50] sm:$0xf] }
  0x25   :  { %v1238_v38 = vld [vmem:[#allocation8 + $0x54] sm:$0xf0]  ;;  %v1022_v39 = vor.u32 %v1255_v34, %v1019_v36  ;;  %v1009_v40 = vld [vmem:[#allocation8 + $0xd0] sm:$0xf]  ;;  %v1237_v42 = vld [vmem:[#allocation8 + $0x54] sm:$0xf] }
  0x26   :  { %v1254_v41 = vld [vmem:[#allocation8 + $0xd4] sm:$0xf0]  ;;  %901 = vmatmul.msk.bf16.vlgmr.msra.gmra.mxu0 %vm156_vm0, %v130_v25  ;;  %v946_v43 = vor.u32 %v1238_v38, %v945_v37  ;;  %v947_v44 = vld [vmem:[#allocation8 + $0x58] sm:$0xf0]  ;;  %v1253_v45 = vld [vmem:[#allocation8 + $0xd4] sm:$0xf] }
  0x27   :  { %416 = vmatpush.bf16.msrb.mxu0 %v966_v21  ;;  %391 = vmatpush.bf16.msra.mxu2 %v954_v30  ;;  %v1011_v46 = vld [vmem:[#allocation8 + $0xd8] sm:$0xf0]  ;;  %v1010_v47 = vor.u32 %v1254_v41, %v1009_v40  ;;  %v937_v48 = vld [vmem:[#allocation8 + $0x40] sm:$0xf]  ;;  %v1236_v49 = vld [vmem:[#allocation8 + $0x44] sm:$0xf0]  ;;  %v950_v50 = vor.u32 %v1237_v42, %v947_v44 }
  0x28   :  { %429 = vmatpush.bf16.msrb.mxu1 %v1030_v26  ;;  %404 = vmatpush.bf16.msra.mxu3 %v1018_v31  ;;  %v1001_v51 = vld [vmem:[#allocation8 + $0xc0] sm:$0xf]  ;;  %v1252_v52 = vld [vmem:[#allocation8 + $0xc4] sm:$0xf0]  ;;  %v1014_v53 = vor.u32 %v1253_v45, %v1011_v46  ;;  %v1235_v54 = vld [vmem:[#allocation8 + $0x44] sm:$0xf]  ;;  %v938_v56 = vor.u32 %v1236_v49, %v937_v48 }
  0x29   :  { %902 = vmatmul.msk.bf16.vlgmr.msra.gmra.mxu1 %vm156_vm0, %v130_v25  ;;  %v939_v55 = vld [vmem:[#allocation8 + $0x48] sm:$0xf0]  ;;  %v1251_v57 = vld [vmem:[#allocation8 + $0xc4] sm:$0xf]  ;;  %v1002_v59 = vor.u32 %v1252_v52, %v1001_v51  ;;  %v929_v60 = vld [vmem:[#allocation8 + $0x30] sm:$0xf] }
  0x2a   :  { %v1003_v58 = vld [vmem:[#allocation8 + $0xc8] sm:$0xf0]  ;;  %v1234_v61 = vld [vmem:[#allocation8 + $0x34] sm:$0xf0]  ;;  %v942_v62 = vor.u32 %v1235_v54, %v939_v55  ;;  %v993_v63 = vld [vmem:[#allocation8 + $0xb0] sm:$0xf] }
  0x2b   :  { %417 = vmatpush.bf16.msrb.mxu0 %v958_v35  ;;  %392 = vmatpush.bf16.msra.mxu2 %v946_v43  ;;  %v1250_v0 = vld [vmem:[#allocation8 + $0xb4] sm:$0xf0]  ;;  %v1006_v1 = vor.u32 %v1251_v57, %v1003_v58  ;;  %v1233_v2 = vld [vmem:[#allocation8 + $0x34] sm:$0xf]  ;;  %v931_v3 = vld [vmem:[#allocation8 + $0x38] sm:$0xf0]  ;;  %v930_v4 = vor.u32 %v1234_v61, %v929_v60 }
  0x2c   :  { %430 = vmatpush.bf16.msrb.mxu1 %v1022_v39  ;;  %405 = vmatpush.bf16.msra.mxu3 %v1010_v47  ;;  %v1249_v5 = vld [vmem:[#allocation8 + $0xb4] sm:$0xf]  ;;  %v995_v6 = vld [vmem:[#allocation8 + $0xb8] sm:$0xf0]  ;;  %v994_v7 = vor.u32 %v1250_v0, %v993_v63  ;;  %v921_v8 = vld [vmem:[#allocation8 + $0x20] sm:$0xf]  ;;  %v934_v10 = vor.u32 %v1233_v2, %v931_v3 }
  0x2d   :  { %v1232_v9 = vld [vmem:[#allocation8 + $0x24] sm:$0xf0]  ;;  %v985_v11 = vld [vmem:[#allocation8 + $0xa0] sm:$0xf]  ;;  %v998_v13 = vor.u32 %v1249_v5, %v995_v6  ;;  %v1231_v14 = vld [vmem:[#allocation8 + $0x24] sm:$0xf] }
  0x2e   :  { %v1248_v12 = vld [vmem:[#allocation8 + $0xa4] sm:$0xf0]  ;;  %v923_v15 = vld [vmem:[#allocation8 + $0x28] sm:$0xf0]  ;;  %v922_v16 = vor.u32 %v1232_v9, %v921_v8  ;;  %v1247_v17 = vld [vmem:[#allocation8 + $0xa4] sm:$0xf] }
  0x2f   :  { %418 = vmatpush.bf16.msrb.mxu0 %v950_v50  ;;  %393 = vmatpush.bf16.msra.mxu2 %v938_v56  ;;  %v987_v18 = vld [vmem:[#allocation8 + $0xa8] sm:$0xf0]  ;;  %v986_v19 = vor.u32 %v1248_v12, %v985_v11  ;;  %v926_v20 = vor.u32 %v1231_v14, %v923_v15  ;;  %v913_v22 = vld [vmem:[#allocation8 + $0x10] sm:$0xf]  ;;  %v1230_v23 = vld [vmem:[#allocation8 + $0x14] sm:$0xf0] }
  0x30   :  { %431 = vmatpush.bf16.msrb.mxu1 %v1014_v53  ;;  %406 = vmatpush.bf16.msra.mxu3 %v1002_v59  ;;  %v990_v21 = vor.u32 %v1247_v17, %v987_v18  ;;  %v914_v24 = vor.u32 %v1230_v23, %v913_v22  ;;  %v977_v25 = vld [vmem:[#allocation8 + $0x90] sm:$0xf]  ;;  %v1246_v26 = vld [vmem:[#allocation8 + $0x94] sm:$0xf0]  ;;  %v1229_v27 = vld [vmem:[#allocation8 + $0x14] sm:$0xf] }
  0x31   :  { %v978_v28 = vor.u32 %v1246_v26, %v977_v25  ;;  %v915_v29 = vld [vmem:[#allocation8 + $0x18] sm:$0xf0]  ;;  %v1245_v30 = vld [vmem:[#allocation8 + $0x94] sm:$0xf]  ;;  %v905_v34 = vld [vmem:[#allocation8] sm:$0xf] }
  0x32   :  { %v979_v31 = vld [vmem:[#allocation8 + $0x98] sm:$0xf0]  ;;  %v918_v32 = vor.u32 %v1229_v27, %v915_v29  ;;  %v1228_v35 = vld [vmem:[#allocation8 + $0x4] sm:$0xf0]  ;;  %v969_v36 = vld [vmem:[#allocation8 + $0x80] sm:$0xf] }
  0x33   :  { %419 = vmatpush.bf16.msrb.mxu0 %v942_v62  ;;  %394 = vmatpush.bf16.msra.mxu2 %v930_v4  ;;  %v982_v33 = vor.u32 %v1245_v30, %v979_v31  ;;  %v906_v37 = vor.u32 %v1228_v35, %v905_v34  ;;  %v1244_v38 = vld [vmem:[#allocation8 + $0x84] sm:$0xf0]  ;;  %v1227_v39 = vld [vmem:[#allocation8 + $0x4] sm:$0xf]  ;;  %v907_v40 = vld [vmem:[#allocation8 + $0x8] sm:$0xf0] }
  0x34   :  { %432 = vmatpush.bf16.msrb.mxu1 %v1006_v1  ;;  %407 = vmatpush.bf16.msra.mxu3 %v994_v7  ;;  %v970_v41 = vor.u32 %v1244_v38, %v969_v36  ;;  %v910_v42 = vor.u32 %v1227_v39, %v907_v40  ;;  %v1243_v43 = vld [vmem:[#allocation8 + $0x84] sm:$0xf]  ;;  %v971_v44 = vld [vmem:[#allocation8 + $0x88] sm:$0xf0]  ;;  %v1153_v46 = vld [vmem:[#allocation10 + $0xf0] sm:$0xf] }
  0x35   :  { %v974_v45 = vor.u32 %v1243_v43, %v971_v44  ;;  %v1290_v47 = vld [vmem:[#allocation10 + $0xf4] sm:$0xf0]  ;;  %v1289_v48 = vld [vmem:[#allocation10 + $0xf4] sm:$0xf]  ;;  %v1155_v50 = vld [vmem:[#allocation10 + $0xf8] sm:$0xf0] }
  0x36   :  { %v1154_v49 = vor.u32 %v1290_v47, %v1153_v46  ;;  %v1145_v51 = vld [vmem:[#allocation10 + $0xe0] sm:$0xf]  ;;  %v1288_v52 = vld [vmem:[#allocation10 + $0xe4] sm:$0xf0]  ;;  %v1158_v53 = vor.u32 %v1289_v48, %v1155_v50  ;;  %v1287_v54 = vld [vmem:[#allocation10 + $0xe4] sm:$0xf] }
  0x37   :  { %420 = vmatpush.bf16.msrb.mxu0 %v934_v10  ;;  %395 = vmatpush.bf16.msra.mxu2 %v922_v16  ;;  %v1147_v55 = vld [vmem:[#allocation10 + $0xe8] sm:$0xf0]  ;;  %v1089_v56 = vld [vmem:[#allocation10 + $0x70] sm:$0xf]  ;;  %v1146_v57 = vor.u32 %v1288_v52, %v1145_v51  ;;  %v1274_v58 = vld [vmem:[#allocation10 + $0x74] sm:$0xf0] }
  0x38   :  { %433 = vmatpush.bf16.msrb.mxu1 %v998_v13  ;;  %408 = vmatpush.bf16.msra.mxu3 %v986_v19  ;;  %v1273_v59 = vld [vmem:[#allocation10 + $0x74] sm:$0xf]  ;;  %v1091_v60 = vld [vmem:[#allocation10 + $0x78] sm:$0xf0]  ;;  %v1150_v61 = vor.u32 %v1287_v54, %v1147_v55  ;;  %v1090_v62 = vor.u32 %v1274_v58, %v1089_v56  ;;  %v1137_v0 = vld [vmem:[#allocation10 + $0xd0] sm:$0xf] }
  0x39   :  { %v1094_v63 = vor.u32 %v1273_v59, %v1091_v60  ;;  %v1286_v1 = vld [vmem:[#allocation10 + $0xd4] sm:$0xf0]  ;;  %v1285_v2 = vld [vmem:[#allocation10 + $0xd4] sm:$0xf]  ;;  %v1139_v3 = vld [vmem:[#allocation10 + $0xd8] sm:$0xf0] }
  0x3a   :  { %v1081_v4 = vld [vmem:[#allocation10 + $0x60] sm:$0xf]  ;;  %v1272_v5 = vld [vmem:[#allocation10 + $0x64] sm:$0xf0]  ;;  %v1271_v7 = vld [vmem:[#allocation10 + $0x64] sm:$0xf]  ;;  %v1138_v9 = vor.u32 %v1286_v1, %v1137_v0  ;;  %v1142_v13 = vor.u32 %v1285_v2, %v1139_v3 }
  0x3b   :  { %421 = vmatpush.bf16.msrb.mxu0 %v926_v20  ;;  %396 = vmatpush.bf16.msra.mxu2 %v914_v24  ;;  %v1082_v6 = vor.u32 %v1272_v5, %v1081_v4  ;;  %v1083_v8 = vld [vmem:[#allocation10 + $0x68] sm:$0xf0]  ;;  %v1129_v11 = vld [vmem:[#allocation10 + $0xc0] sm:$0xf]  ;;  %v1284_v12 = vld [vmem:[#allocation10 + $0xc4] sm:$0xf0] }
  0x3c   :  { %434 = vmatpush.bf16.msrb.mxu1 %v990_v21  ;;  %409 = vmatpush.bf16.msra.mxu3 %v978_v28  ;;  %v1086_v10 = vor.u32 %v1271_v7, %v1083_v8  ;;  %v1073_v14 = vld [vmem:[#allocation10 + $0x50] sm:$0xf]  ;;  %v1270_v15 = vld [vmem:[#allocation10 + $0x54] sm:$0xf0]  ;;  %v1269_v16 = vld [vmem:[#allocation10 + $0x54] sm:$0xf]  ;;  %v1130_v23 = vor.u32 %v1284_v12, %v1129_v11 }
  0x3d   :  { %v1283_v17 = vld [vmem:[#allocation10 + $0xc4] sm:$0xf]  ;;  %v1131_v18 = vld [vmem:[#allocation10 + $0xc8] sm:$0xf0]  ;;  %v1075_v19 = vld [vmem:[#allocation10 + $0x58] sm:$0xf0]  ;;  %v1074_v20 = vor.u32 %v1270_v15, %v1073_v14 }
  0x3e   :  { %v1078_v21 = vor.u32 %v1269_v16, %v1075_v19  ;;  %v1065_v22 = vld [vmem:[#allocation10 + $0x40] sm:$0xf]  ;;  %v1268_v24 = vld [vmem:[#allocation10 + $0x44] sm:$0xf0]  ;;  %v1267_v25 = vld [vmem:[#allocation10 + $0x44] sm:$0xf]  ;;  %v1134_v27 = vor.u32 %v1283_v17, %v1131_v18 }
  0x3f   :  { %422 = vmatpush.bf16.msrb.mxu0 %v918_v32  ;;  %397 = vmatpush.bf16.msra.mxu2 %v906_v37  ;;  %v1067_v26 = vld [vmem:[#allocation10 + $0x48] sm:$0xf0]  ;;  %v1121_v28 = vld [vmem:[#allocation10 + $0xb0] sm:$0xf]  ;;  %v1282_v29 = vld [vmem:[#allocation10 + $0xb4] sm:$0xf0]  ;;  %v1066_v32 = vor.u32 %v1268_v24, %v1065_v22 }
  0x40   :  { %435 = vmatpush.bf16.msrb.mxu1 %v982_v33  ;;  %410 = vmatpush.bf16.msra.mxu3 %v970_v41  ;;  %v1281_v30 = vld [vmem:[#allocation10 + $0xb4] sm:$0xf]  ;;  %v1123_v31 = vld [vmem:[#allocation10 + $0xb8] sm:$0xf0]  ;;  %v1070_v33 = vor.u32 %v1267_v25, %v1067_v26  ;;  %v1122_v34 = vor.u32 %v1282_v29, %v1121_v28  ;;  %v1113_v51 = vld [vmem:[#allocation10 + $0xa0] sm:$0xf] }
  0x41   :  { %v129_v35 = vld [vmem:[#allocation7] sm:$0x3]  ;;  %v1126_v36 = vor.u32 %v1281_v30, %v1123_v31  ;;  %v1280_v52 = vld [vmem:[#allocation10 + $0xa4] sm:$0xf0]  ;;  %v1115_v55 = vld [vmem:[#allocation10 + $0xa8] sm:$0xf0] }
  0x42   :  { %v132_v37 = vperm.slane %v129_v35, 0  ;;  %v133_v38 = vperm.slane %v129_v35, 1  ;;  %v1114_v54 = vor.u32 %v1280_v52, %v1113_v51  ;;  %v1266_v58 = vld [vmem:[#allocation10 + $0x34] sm:$0xf0]  ;;  %v1265_v59 = vld [vmem:[#allocation10 + $0x34] sm:$0xf] }
  0x43   :  { %423 = vmatpush.bf16.msrb.mxu0 %v910_v42  ;;  %646 = vmatpush.bf16.msrb.mxu2 %v1090_v62  ;;  %v1278_v0 = vld [vmem:[#allocation10 + $0x94] sm:$0xf0]  ;;  %v1277_v1 = vld [vmem:[#allocation10 + $0x94] sm:$0xf]  ;;  %v1107_v3 = vld [vmem:[#allocation10 + $0x98] sm:$0xf0] }
  0x44   :  { %436 = vmatpush.bf16.msrb.mxu1 %v974_v45  ;;  %659 = vmatpush.bf16.msrb.mxu3 %v1154_v49  ;;  %v1110_v4 = vor.u32 %v1277_v1, %v1107_v3  ;;  %v1049_v5 = vld [vmem:[#allocation10 + $0x20] sm:$0xf]  ;;  %v1263_v7 = vld [vmem:[#allocation10 + $0x24] sm:$0xf]  ;;  %v1276_v12 = vld [vmem:[#allocation10 + $0x84] sm:$0xf0] }
  0x45   :  { %v1097_v11 = vld [vmem:[#allocation10 + $0x80] sm:$0xf]  ;;  %v1275_v14 = vld [vmem:[#allocation10 + $0x84] sm:$0xf]  ;;  %v1099_v15 = vld [vmem:[#allocation10 + $0x88] sm:$0xf0] }
  0x46   :  { %v1102_v16 = vor.u32 %v1275_v14, %v1099_v15  ;;  %v1041_v17 = vld [vmem:[#allocation10 + $0x10] sm:$0xf]  ;;  %v1262_v18 = vld [vmem:[#allocation10 + $0x14] sm:$0xf0]  ;;  %v1261_v19 = vld [vmem:[#allocation10 + $0x14] sm:$0xf] }
  0x47   :  { %672 = vmatpush.bf16.msra.mxu0 %v1094_v63  ;;  %647 = vmatpush.bf16.msrb.mxu2 %v1082_v6  ;;  %v1105_v63 = vld [vmem:[#allocation10 + $0x90] sm:$0xf]  ;;  %v1264_v6 = vld [vmem:[#allocation10 + $0x24] sm:$0xf0]  ;;  %v1259_v25 = vld [vmem:[#allocation10 + $0x4] sm:$0xf] }
  0x48   :  { %685 = vmatpush.bf16.msra.mxu1 %v1158_v53  ;;  %660 = vmatpush.bf16.msrb.mxu3 %v1146_v57  ;;  %v1279_v53 = vld [vmem:[#allocation10 + $0xa4] sm:$0xf]  ;;  %v1057_v57 = vld [vmem:[#allocation10 + $0x30] sm:$0xf]  ;;  %v1106_v2 = vor.u32 %v1278_v0, %v1105_v63  ;;  %v1050_v8 = vor.u32 %v1264_v6, %v1049_v5  ;;  %v1260_v24 = vld [vmem:[#allocation10 + $0x4] sm:$0xf0] }
  0x49   :  { %v1118_v56 = vor.u32 %v1279_v53, %v1115_v55  ;;  %v1058_v60 = vor.u32 %v1266_v58, %v1057_v57  ;;  %v1306_v29 = vld [vmem:[#allocation11 + $0x78] sm:$0xff]  ;;  %v1305_v31 = vld [vmem:[#allocation11 + $0x70] sm:$0xff]  ;;  %v1303_v35 = vld [vmem:[#allocation11 + $0x60] sm:$0xff]  ;;  %s1507_s20 = smov [#allocation13]   ;;  %s872_s3 = sshll.u32 %s1608_s9, 4  ;;  %s873_s3 = int_to_ptr.hbm [resolvable:$true] %s872_s3 }
  0x4a   :  { %v1298_v30 = vld [vmem:[#allocation11 + $0x38] sm:$0xff]  ;;  %v1295_v58 = vld [vmem:[#allocation11 + $0x20] sm:$0xff]  ;;  %v1292_v0 = vld [vmem:[#allocation11 + $0x8] sm:$0xff]  ;;  %s870_s21 = sshll.u32 %s1507_s20, 4  ;;  %s871_s21 = int_to_ptr.vmem [resolvable:$true] %s870_s21 }
  0x4b   :  { %673 = vmatpush.bf16.msra.mxu0 %v1086_v10  ;;  %648 = vmatpush.bf16.msrb.mxu2 %v1074_v20  ;;  %v1042_v20 = vor.u32 %v1262_v18, %v1041_v17  ;;  %v1302_v57 = vld [vmem:[#allocation11 + $0x58] sm:$0xff]  ;;  %v1299_v63 = vld [vmem:[#allocation11 + $0x40] sm:$0xff]  ;;  %v478_v3 = vld [vmem:[%s1605_s6] sm:$0x3] }
  0x4c   :  { %686 = vmatpush.bf16.msra.mxu1 %v1150_v61  ;;  %661 = vmatpush.bf16.msrb.mxu3 %v1138_v9  ;;  %v1059_v61 = vld [vmem:[#allocation10 + $0x38] sm:$0xf0]  ;;  %v1051_v9 = vld [vmem:[#allocation10 + $0x28] sm:$0xf0]  ;;  %v1291_v1 = vld [vmem:[#allocation11] sm:$0xff] }
  0x4d   :  { %v1062_v62 = vor.u32 %v1265_v59, %v1059_v61  ;;  %v1054_v10 = vor.u32 %v1263_v7, %v1051_v9  ;;  %v1301_v59 = vld [vmem:[#allocation11 + $0x50] sm:$0xff]  ;;  %v1300_v61 = vld [vmem:[#allocation11 + $0x48] sm:$0xff] }
  0x4f   :  { %674 = vmatpush.bf16.msra.mxu0 %v1078_v21  ;;  %649 = vmatpush.bf16.msrb.mxu2 %v1066_v32  ;;  %v1043_v21 = vld [vmem:[#allocation10 + $0x18] sm:$0xf0]  ;;  %v1297_v32 = vld [vmem:[#allocation11 + $0x30] sm:$0xff] }
  0x50   :  { %687 = vmatpush.bf16.msra.mxu1 %v1142_v13  ;;  %662 = vmatpush.bf16.msrb.mxu3 %v1130_v23  ;;  %v1098_v13 = vor.u32 %v1276_v12, %v1097_v11  ;;  %v1046_v22 = vor.u32 %v1261_v19, %v1043_v21  ;;  %v1033_v23 = vld [vmem:[#allocation10] sm:$0xf] }
  0x51   :  { %v1034_v26 = vor.u32 %v1260_v24, %v1033_v23  ;;  %v1318_v24 = vld [vmem:[%s1607_s8] ss:$0 sm:$0xff] }
  0x53   :  { %675 = vmatpush.bf16.msra.mxu0 %v1070_v33  ;;  %650 = vmatpush.bf16.msrb.mxu2 %v1058_v60  ;;  %v1304_v33 = vld [vmem:[#allocation11 + $0x68] sm:$0xff]  ;;  %v1294_v60 = vld [vmem:[#allocation11 + $0x18] sm:$0xff] }
  0x54   :  { %688 = vmatpush.bf16.msra.mxu1 %v1134_v27  ;;  %663 = vmatpush.bf16.msrb.mxu3 %v1122_v34  ;;  %v1035_v27 = vld [vmem:[#allocation10 + $0x8] sm:$0xf0]  ;;  %v222_v34 = vld [vmem:[%s1603_s4] sm:$0x3] }
  0x55   :  { %v1038_v28 = vor.u32 %v1259_v25, %v1035_v27 }
  0x57   :  { %676 = vmatpush.bf16.msra.mxu0 %v1062_v62  ;;  %651 = vmatpush.bf16.msrb.mxu2 %v1050_v8  ;;  %v1293_v62 = vld [vmem:[#allocation11 + $0x10] sm:$0xff] }
  0x58   :  { %689 = vmatpush.bf16.msra.mxu1 %v1126_v36  ;;  %664 = vmatpush.bf16.msrb.mxu3 %v1114_v54  ;;  %v227_v36 = vperm.slane %v222_v34, 1 }
  0x5b   :  { %677 = vmatpush.bf16.msra.mxu0 %v1054_v10  ;;  %652 = vmatpush.bf16.msrb.mxu2 %v1042_v20  ;;  %v482_v10 = vperm.slane %v478_v3, 0 }
  0x5c   :  { %690 = vmatpush.bf16.msra.mxu1 %v1118_v56  ;;  %665 = vmatpush.bf16.msrb.mxu3 %v1106_v2  ;;  %v1296_v56 = vld [vmem:[#allocation11 + $0x28] sm:$0xff] }
  0x5f   :  { %678 = vmatpush.bf16.msra.mxu0 %v1046_v22  ;;  %653 = vmatpush.bf16.msrb.mxu2 %v1034_v26 }
  0x60   :  { %691 = vmatpush.bf16.msra.mxu1 %v1110_v4  ;;  %666 = vmatpush.bf16.msrb.mxu3 %v1098_v13  ;;  %v483_v4 = vperm.slane %v478_v3, 1 }
  0x63   :  { %679 = vmatpush.bf16.msra.mxu0 %v1038_v28 }
  0x64   :  { %692 = vmatpush.bf16.msra.mxu1 %v1102_v16 }
  0xa3   :  { %v169_v39 = vpop.f32.mrf.mxu0 }
  0xa4   :  { %v170_v40 = vadd.f32 %v169_v39, %v132_v37 }
  0xa6   :  { %v182_v41 = vpop.f32.mrf.mxu1  ;;  %v186_v43 = vmul.f32 0.2, %v170_v40 }
  0xa7   :  { %v183_v42 = vadd.f32 %v182_v41, %v133_v38  ;;  %v226_v41 = vperm.slane %v222_v34, 0 }
  0xa8   :  { %v188_v45 = vmax.f32 %v170_v40, %v186_v43 }
  0xa9   :  { %v187_v44 = vmul.f32 0.2, %v183_v42 }
  0xaa   :  { %v223_v47 = vpack.c.bf16 %v188_v45, %v188_v45 }
  0xab   :  { %v189_v46 = vmax.f32 %v183_v42, %v187_v44  ;;  %v171_v48 = vpop.f32.mrf.mxu0 }
  0xac   :  { %398 = vmatmul.bf16.vlgmr.msra.gmra.mxu2 %v223_v47  ;;  %424 = vmatmul.bf16.vlgmr.msrb.gmra.mxu0 %v223_v47 }
  0xad   :  { %v224_v49 = vpack.c.bf16 %v189_v46, %v189_v46  ;;  %836 = vmatpush.bf16.msra.mxu2 %v1298_v30 }
  0xae   :  { %v184_v50 = vpop.f32.mrf.mxu1 }
  0xaf   :  { %411 = vmatmul.bf16.vlgmr.msra.gmra.mxu3 %v224_v49  ;;  %437 = vmatmul.bf16.vlgmr.msrb.gmra.mxu1 %v224_v49 }
  0xb0   :  { %849 = vmatpush.bf16.msra.mxu3 %v1306_v29 }
  0xb1   :  { %837 = vmatpush.bf16.msra.mxu2 %v1297_v32 }
  0xb4   :  { %850 = vmatpush.bf16.msra.mxu3 %v1305_v31 }
  0xb5   :  { %838 = vmatpush.bf16.msra.mxu2 %v1296_v56 }
  0xb8   :  { %851 = vmatpush.bf16.msra.mxu3 %v1304_v33 }
  0xb9   :  { %839 = vmatpush.bf16.msra.mxu2 %v1295_v58 }
  0xbc   :  { %852 = vmatpush.bf16.msra.mxu3 %v1303_v35 }
  0xbd   :  { %840 = vmatpush.bf16.msra.mxu2 %v1294_v60 }
  0xc0   :  { %853 = vmatpush.bf16.msra.mxu3 %v1302_v57 }
  0xc1   :  { %841 = vmatpush.bf16.msra.mxu2 %v1293_v62 }
  0xc4   :  { %854 = vmatpush.bf16.msra.mxu3 %v1301_v59 }
  0xc5   :  { %842 = vmatpush.bf16.msra.mxu2 %v1292_v0 }
  0xc8   :  { %855 = vmatpush.bf16.msra.mxu3 %v1300_v61 }
  0xc9   :  { %843 = vmatpush.bf16.msra.mxu2 %v1291_v1 }
  0xcc   :  { %856 = vmatpush.bf16.msra.mxu3 %v1299_v63 }
 0x129   :  { %v425_v37 = vpop.f32.mrf.mxu0 }
 0x12a   :  { %v426_v38 = vadd.f32 %v425_v37, %v227_v36 }
 0x12c   :  { %v438_v39 = vpop.f32.mrf.mxu1 }
 0x12d   :  { %v439_v40 = vadd.f32 %v438_v39, %v426_v38 }
 0x12f   :  { %v443_v42 = vmul.f32 0.2, %v439_v40  ;;  %v399_v43 = vpop.f32.mrf.mxu2 }
 0x130   :  { %v400_v45 = vadd.f32 %v399_v43, %v226_v41 }
 0x131   :  { %v445_v44 = vmax.f32 %v439_v40, %v443_v42  ;;  %v427_v47 = vpop.f32.mrf.mxu0 }
 0x132   :  { %v412_v46 = vpop.f32.mrf.mxu3 }
 0x133   :  { %v480_v48 = vpack.c.bf16 %v445_v44, %v445_v44  ;;  %v413_v49 = vadd.f32 %v412_v46, %v400_v45 }
 0x134   :  { %v440_v50 = vpop.f32.mrf.mxu1 }
 0x135   :  { %v442_v51 = vmul.f32 0.2, %v413_v49  ;;  %667 = vmatmul.bf16.vlgmr.msrb.gmra.mxu3 %v480_v48  ;;  %693 = vmatmul.bf16.vlgmr.msra.gmra.mxu1 %v480_v48 }
 0x137   :  { %v444_v52 = vmax.f32 %v413_v49, %v442_v51  ;;  %v401_v53 = vpop.f32.mrf.mxu2 }
 0x139   :  { %v479_v54 = vpack.c.bf16 %v444_v52, %v444_v52 }
 0x13a   :  { %v414_v55 = vpop.f32.mrf.mxu3 }
 0x13b   :  { %654 = vmatmul.bf16.vlgmr.msrb.gmra.mxu2 %v479_v54  ;;  %680 = vmatmul.bf16.vlgmr.msra.gmra.mxu0 %v479_v54 }
 0x1b2   :  { %v694_v2 = vpop.f32.mrf.mxu1 }
 0x1b8   :  { %v668_v5 = vpop.f32.mrf.mxu3  ;;  %v681_v6 = vpop.f32.mrf.mxu0 }
 0x1b9   :  { %v682_v7 = vadd.f32 %v681_v6, %v483_v4 }
 0x1ba   :  { %v696_v8 = vpop.f32.mrf.mxu1 }
 0x1bb   :  { %v695_v9 = vadd.f32 %v694_v2, %v682_v7 }
 0x1bd   :  { %v699_v11 = vmul.f32 0.2, %v695_v9 }
 0x1be   :  { %v655_v12 = vpop.f32.mrf.mxu2 }
 0x1bf   :  { %v701_v13 = vmax.f32 %v695_v9, %v699_v11  ;;  %v656_v14 = vadd.f32 %v655_v12, %v482_v10 }
 0x1c0   :  { %v670_v15 = vpop.f32.mrf.mxu3  ;;  %v683_v16 = vpop.f32.mrf.mxu0 }
 0x1c1   :  { %v736_v17 = vpack.c.bf16 %v701_v13, %v701_v13  ;;  %v669_v18 = vadd.f32 %v668_v5, %v656_v14 }
 0x1c3   :  { %v698_v19 = vmul.f32 0.2, %v669_v18  ;;  %857 = vmatmul.bf16.vlgmr.msra.gmra.mxu3 %v736_v17 }
 0x1c5   :  { %v700_v20 = vmax.f32 %v669_v18, %v698_v19 }
 0x1c6   :  { %v657_v21 = vpop.f32.mrf.mxu2 }
 0x1c7   :  { %v735_v22 = vpack.c.bf16 %v700_v20, %v700_v20 }
 0x1c9   :  { %844 = vmatmul.bf16.vlgmr.msra.gmra.mxu2 %v735_v22 }
 0x246   :  { %v858_v23 = vpop.f32.mrf.mxu3 }
 0x24c   :  { %v845_v25 = vpop.f32.mrf.mxu2 }
 0x24d   :  { %v846_v26 = vadd.f32 %v1318_v24, %v845_v25 }
 0x24e   :  { %v860_v27 = vpop.f32.mrf.mxu3 }
 0x24f   :  { %v859_v28 = vadd.f32 %v858_v23, %v846_v26 }
 0x251   :  { %v862_v29 = vmul.f32 0.2, %v859_v28 }
 0x253   :  { %v863_v30 = vmax.f32 %v859_v28, %v862_v29 }
 0x254   :  { %v847_v31 = vpop.f32.mrf.mxu2 }
 0x255   :  { %864 = vst [vmem:[#allocation13] sm:$0xff] %v863_v30 }
 0x256   :  { %875 = dma.vmem_to_hbm [thread:$0]  %s871_s21, 128, %s873_s3, [#allocation4]  }
 0x257   :  { %1495 = dma.done.wait [#allocation4], 128  }
 0x258   :  { %1496 = vsyncadd [#allocation4], 4294967168 }
 0x259   :  { %880 = vsyncpa [#allocation3], 1 }
 0x25a   :  { %881 = vsyncpa [#allocation6], 1 }
 0x25b   :  { %882 = vsyncpa [#allocation9], 1 }
 0x25c   :  { %883 = vsyncpa [#allocation12], 1 }
 0x25d   :  { %884 = vsyncpa [#allocation4], 1 }

</bundles_post_ra>
